<compile_context>
chip_gen: v5e
topology: v5e:2x2
jax: 0.10.0
libtpu: 0.0.40
codegen_flags: <defaults>
</compile_context>

<pallas_src>
import functools

import jax
import jax.numpy as jnp
from jax.experimental import pallas as pl
from jax.experimental.pallas import tpu as pltpu

HIDDEN = 128


def _round_up(x, m):
    return (x + m - 1) // m * m


def _critic_kernel(xy_ref, w1_ref, w23_ref, w4_ref, b_ref, out_ref):
    """One batch tile of the 4-layer MLP; all weights stay VMEM-resident.

    xy_ref : (bt, k1)        bf16   [x | y | zero pad]
    w1_ref : (k1, 128)       bf16   zero-padded rows beyond input_dim
    w23_ref: (2, 128, 128)   bf16
    w4_ref : (128, 128)      bf16   zero-padded cols beyond output_dim
    b_ref  : (4, 128)        f32    [b1; b2; b3; b4(zero-padded)]
    out_ref: (bt, 128)       f32    lane-dense; cols beyond output_dim are junk-free zeros+b4pad
    """
    # Layer 1 (fused concat, single aligned K matmul)
    h = jnp.dot(xy_ref[...], w1_ref[...], preferred_element_type=jnp.float32)
    h = jnp.maximum(h + b_ref[0:1, :], 0.0)                    # (bt, 128)

    # Layer 2
    h = jnp.dot(h.astype(jnp.bfloat16), w23_ref[0],
                preferred_element_type=jnp.float32)
    h = jnp.maximum(h + b_ref[1:2, :], 0.0)                    # (bt, 128)

    # Layer 3
    h = jnp.dot(h.astype(jnp.bfloat16), w23_ref[1],
                preferred_element_type=jnp.float32)
    h = jnp.maximum(h + b_ref[2:3, :], 0.0)                    # (bt, 128)

    # Layer 4 (lane-dense 128-wide output slab)
    q = jnp.dot(h.astype(jnp.bfloat16), w4_ref[...],
                preferred_element_type=jnp.float32)
    out_ref[...] = q + b_ref[3:4, :]                           # (bt, 128)


def pack_params(params, state_dim):
    """One-time repack of fp32 Linear params into kernel-friendly operands."""
    in_dim = params["w1"].shape[0]
    out_dim = params["w4"].shape[1]
    assert out_dim <= HIDDEN, "output-slab packing assumes output_dim <= 128"
    assert state_dim < in_dim

    k1 = _round_up(in_dim, 8)                                  # aligned K for layer 1
    w1 = jnp.zeros((k1, HIDDEN), jnp.float32).at[:in_dim, :].set(params["w1"])
    w4 = jnp.zeros((HIDDEN, HIDDEN), jnp.float32).at[:, :out_dim].set(params["w4"])
    b4 = jnp.zeros((1, HIDDEN), jnp.float32).at[:, :out_dim].set(params["b4"])
    return {
        "w1": w1.astype(jnp.bfloat16),                                         # (k1, 128)
        "w23": jnp.stack([params["w2"], params["w3"]]).astype(jnp.bfloat16),   # (2, 128, 128)
        "w4": w4.astype(jnp.bfloat16),                                         # (128, 128)
        "biases": jnp.concatenate(
            [params["b1"], params["b2"], params["b3"], b4], axis=0),           # (4, 128) f32
    }


@functools.partial(jax.jit, static_argnames=("out_dim", "block_batch"))
def critic_forward(x, y, packed, *, out_dim, block_batch=256):
    """x: (B, state_dim), y: (B, action_dim). Returns (B, out_dim) fp32."""
    B, sd = x.shape
    ad = y.shape[1]
    in_dim = sd + ad
    k1 = packed["w1"].shape[0]
    assert in_dim <= k1

    # Fused concat + lane/sublane-friendly zero-pad, cast to bf16 once (outside
    # the pipelined loop).
    xy = jnp.concatenate([x.astype(jnp.float32), y.astype(jnp.float32)], axis=1)

    # Batch tiling: pad to a multiple of the tile. Tile is capped so the grid
    # has >=2 steps whenever the batch allows it, letting ("parallel",) shard
    # the batch tiles across both v7x TensorCores; weights use constant
    # index_maps so they are fetched once and stay resident.
    pB0 = _round_up(B, 8)
    bt = min(block_batch, max(8, _round_up(pl.cdiv(pB0, 2), 8)))
    pB = _round_up(B, bt)
    xy = jnp.pad(xy, ((0, pB - B), (0, k1 - in_dim))).astype(jnp.bfloat16)
    grid = (pB // bt,)

    in_specs = [
        pl.BlockSpec((bt, k1), lambda i: (i, 0)),                # xy slab (batch-tiled)
        pl.BlockSpec((k1, HIDDEN), lambda i: (0, 0)),            # W1        (resident)
        pl.BlockSpec((2, HIDDEN, HIDDEN), lambda i: (0, 0, 0)),  # W2/W3     (resident)
        pl.BlockSpec((HIDDEN, HIDDEN), lambda i: (0, 0)),        # W4 slab   (resident)
        pl.BlockSpec((4, HIDDEN), lambda i: (0, 0)),             # bias slab (resident)
    ]
    out_spec = pl.BlockSpec((bt, HIDDEN), lambda i: (i, 0))      # lane-dense output

    out = pl.pallas_call(
        _critic_kernel,
        grid=grid,
        in_specs=in_specs,
        out_specs=out_spec,
        out_shape=jax.ShapeDtypeStruct((pB, HIDDEN), jnp.float32),
        compiler_params=pltpu.CompilerParams(
            dimension_semantics=("parallel",)),   # batch tiles shard across v7x cores
    )(xy, packed["w1"], packed["w23"], packed["w4"], packed["biases"])

    # Drop padded batch rows and padded output lanes.
    return out[:B, :out_dim]


def init_params(key, input_dim, output_dim, hidden=HIDDEN):
    """torch.nn.Linear-style init (U[-1/sqrt(fan_in), +1/sqrt(fan_in)]).
    Weights stored transposed (in_features, out_features); biases (1, out_features)."""
    dims = [(input_dim, hidden), (hidden, hidden), (hidden, hidden), (hidden, output_dim)]
    params = {}
    for i, (fan_in, fan_out) in enumerate(dims, start=1):
        key, kw, kb = jax.random.split(key, 3)
        bound = 1.0 / jnp.sqrt(jnp.float32(fan_in))
        params[f"w{i}"] = jax.random.uniform(
            kw, (fan_in, fan_out), jnp.float32, minval=-bound, maxval=bound)
        params[f"b{i}"] = jax.random.uniform(
            kb, (1, fan_out), jnp.float32, minval=-bound, maxval=bound)
    return params


def _reference_forward(x, y, params, quantize_bf16=False):
    """Pure-JAX reference. quantize_bf16=True mirrors the kernel's bf16 MXU inputs
    with fp32 accumulation; False is the exact fp32 PyTorch math."""
    def dot(a, w):
        if quantize_bf16:
            a = a.astype(jnp.bfloat16)
            w = w.astype(jnp.bfloat16)
        return jnp.dot(a, w, preferred_element_type=jnp.float32)

    xy = jnp.concatenate([x, y], axis=1)
    h = jnp.maximum(dot(xy, params["w1"]) + params["b1"], 0.0)
    h = jnp.maximum(dot(h, params["w2"]) + params["b2"], 0.0)
    h = jnp.maximum(dot(h, params["w3"]) + params["b3"], 0.0)
    return dot(h, params["w4"]) + params["b4"]


if __name__ == "__main__":
    # Pendulum-v0 critic: state_dim=3, action_dim=1 -> input_dim=4, output_dim=1.
    batch, state_dim, action_dim, output_dim = 8, 3, 1, 1
    input_dim = state_dim + action_dim

    key = jax.random.PRNGKey(0)
    key, kx, ky = jax.random.split(key, 3)
    x = jax.random.normal(kx, (batch, state_dim), jnp.float32)
    y = jax.random.normal(ky, (batch, action_dim), jnp.float32)

    params = init_params(key, input_dim, output_dim)
    packed = pack_params(params, state_dim)

    out = critic_forward(x, y, packed, out_dim=output_dim)
    out = jax.block_until_ready(out)
    assert out.shape == (batch, output_dim)

    # Tight check against a reference with identical bf16-input / fp32-accum math.
    ref_bf16 = _reference_forward(x, y, params, quantize_bf16=True)
    assert jnp.allclose(out, ref_bf16, atol=2e-3, rtol=2e-3)

    # Loose sanity check against the exact fp32 PyTorch-equivalent math.
    ref_f32 = _reference_forward(x, y, params, quantize_bf16=False)
    assert jnp.allclose(out, ref_f32, atol=5e-2, rtol=5e-2)

    print("KERNEL_OK")
</pallas_src>

<mosaic_0001>
module attributes {stable_mosaic.version = 11 : i64} {
  func.func @_critic_kernel(%arg0: i32, %arg1: memref<8x8xbf16, #tpu.memory_space<vmem>>, %arg2: memref<8x128xbf16, #tpu.memory_space<vmem>>, %arg3: memref<2x128x128xbf16, #tpu.memory_space<vmem>>, %arg4: memref<128x128xbf16, #tpu.memory_space<vmem>>, %arg5: memref<4x128xf32, #tpu.memory_space<vmem>>, %arg6: memref<8x128xf32, #tpu.memory_space<vmem>>) attributes {dimension_semantics = [#tpu.dimension_semantics<parallel>], iteration_bounds = array<i64: 1>, scalar_prefetch = 0 : i64, scratch_operands = 0 : i64, tpu.core_type = #tpu.core_type<tc>, window_params = [{transform_indices = @transform_0, window_bounds = array<i64: 8, 8>}, {pipeline_mode = #tpu.pipeline_mode<synchronous>, transform_indices = @transform_1, window_bounds = array<i64: 8, 128>}, {pipeline_mode = #tpu.pipeline_mode<synchronous>, transform_indices = @transform_2, window_bounds = array<i64: 2, 128, 128>}, {pipeline_mode = #tpu.pipeline_mode<synchronous>, transform_indices = @transform_3, window_bounds = array<i64: 128, 128>}, {pipeline_mode = #tpu.pipeline_mode<synchronous>, transform_indices = @transform_4, window_bounds = array<i64: 4, 128>}, {transform_indices = @transform_5, window_bounds = array<i64: 8, 128>}]} {
    %c0 = arith.constant 0 : index
    %c0_0 = arith.constant 0 : index
    %0 = vector.load %arg1[%c0, %c0_0] : memref<8x8xbf16, #tpu.memory_space<vmem>>, vector<8x8xbf16>
    %c0_1 = arith.constant 0 : index
    %c0_2 = arith.constant 0 : index
    %1 = vector.load %arg2[%c0_1, %c0_2] : memref<8x128xbf16, #tpu.memory_space<vmem>>, vector<8x128xbf16>
    %cst = arith.constant dense<0.000000e+00> : vector<8x128xf32>
    %2 = tpu.matmul %0, %1, %cst {dimension_numbers = #tpu.dot_dimension_numbers<[1], [0], [0], [1], [0, 0, 1, 1], [], []>} : vector<8x8xbf16>, vector<8x128xbf16>, vector<8x128xf32> -> vector<8x128xf32>
    %c0_3 = arith.constant 0 : index
    %c0_4 = arith.constant 0 : index
    %3 = vector.load %arg5[%c0_3, %c0_4] : memref<4x128xf32, #tpu.memory_space<vmem>>, vector<1x128xf32>
    %4 = vector.broadcast %3 : vector<1x128xf32> to vector<8x128xf32>
    %5 = arith.addf %2, %4 : vector<8x128xf32>
    %cst_5 = arith.constant 0.000000e+00 : f32
    %6 = vector.broadcast %cst_5 : f32 to vector<8x128xf32>
    %7 = arith.maximumf %5, %6 : vector<8x128xf32>
    %8 = arith.truncf %7 : vector<8x128xf32> to vector<8x128xbf16>
    %c0_6 = arith.constant 0 : index
    %c0_7 = arith.constant 0 : index
    %c0_8 = arith.constant 0 : index
    %9 = vector.load %arg3[%c0_6, %c0_7, %c0_8] : memref<2x128x128xbf16, #tpu.memory_space<vmem>>, vector<1x128x128xbf16>
    %10 = vector.shape_cast %9 : vector<1x128x128xbf16> to vector<128x128xbf16>
    %cst_9 = arith.constant dense<0.000000e+00> : vector<8x128xf32>
    %11 = tpu.matmul %8, %10, %cst_9 {dimension_numbers = #tpu.dot_dimension_numbers<[1], [0], [0], [1], [0, 0, 1, 1], [], []>} : vector<8x128xbf16>, vector<128x128xbf16>, vector<8x128xf32> -> vector<8x128xf32>
    %c1 = arith.constant 1 : index
    %c0_10 = arith.constant 0 : index
    %12 = vector.load %arg5[%c1, %c0_10] : memref<4x128xf32, #tpu.memory_space<vmem>>, vector<1x128xf32>
    %13 = vector.broadcast %12 : vector<1x128xf32> to vector<8x128xf32>
    %14 = arith.addf %11, %13 : vector<8x128xf32>
    %cst_11 = arith.constant 0.000000e+00 : f32
    %15 = vector.broadcast %cst_11 : f32 to vector<8x128xf32>
    %16 = arith.maximumf %14, %15 : vector<8x128xf32>
    %17 = arith.truncf %16 : vector<8x128xf32> to vector<8x128xbf16>
    %c1_12 = arith.constant 1 : index
    %c0_13 = arith.constant 0 : index
    %c0_14 = arith.constant 0 : index
    %18 = vector.load %arg3[%c1_12, %c0_13, %c0_14] : memref<2x128x128xbf16, #tpu.memory_space<vmem>>, vector<1x128x128xbf16>
    %19 = vector.shape_cast %18 : vector<1x128x128xbf16> to vector<128x128xbf16>
    %cst_15 = arith.constant dense<0.000000e+00> : vector<8x128xf32>
    %20 = tpu.matmul %17, %19, %cst_15 {dimension_numbers = #tpu.dot_dimension_numbers<[1], [0], [0], [1], [0, 0, 1, 1], [], []>} : vector<8x128xbf16>, vector<128x128xbf16>, vector<8x128xf32> -> vector<8x128xf32>
    %c2 = arith.constant 2 : index
    %c0_16 = arith.constant 0 : index
    %21 = vector.load %arg5[%c2, %c0_16] : memref<4x128xf32, #tpu.memory_space<vmem>>, vector<1x128xf32>
    %22 = vector.broadcast %21 : vector<1x128xf32> to vector<8x128xf32>
    %23 = arith.addf %20, %22 : vector<8x128xf32>
    %cst_17 = arith.constant 0.000000e+00 : f32
    %24 = vector.broadcast %cst_17 : f32 to vector<8x128xf32>
    %25 = arith.maximumf %23, %24 : vector<8x128xf32>
    %26 = arith.truncf %25 : vector<8x128xf32> to vector<8x128xbf16>
    %c0_18 = arith.constant 0 : index
    %c0_19 = arith.constant 0 : index
    %27 = vector.load %arg4[%c0_18, %c0_19] : memref<128x128xbf16, #tpu.memory_space<vmem>>, vector<128x128xbf16>
    %cst_20 = arith.constant dense<0.000000e+00> : vector<8x128xf32>
    %28 = tpu.matmul %26, %27, %cst_20 {dimension_numbers = #tpu.dot_dimension_numbers<[1], [0], [0], [1], [0, 0, 1, 1], [], []>} : vector<8x128xbf16>, vector<128x128xbf16>, vector<8x128xf32> -> vector<8x128xf32>
    %c3 = arith.constant 3 : index
    %c0_21 = arith.constant 0 : index
    %29 = vector.load %arg5[%c3, %c0_21] : memref<4x128xf32, #tpu.memory_space<vmem>>, vector<1x128xf32>
    %30 = vector.broadcast %29 : vector<1x128xf32> to vector<8x128xf32>
    %31 = arith.addf %28, %30 : vector<8x128xf32>
    %c0_22 = arith.constant 0 : index
    %c0_23 = arith.constant 0 : index
    %32 = vector.load %arg6[%c0_22, %c0_23] : memref<8x128xf32, #tpu.memory_space<vmem>>, vector<8x128xf32>
    tpu.vector_store %arg6[%c0_22, %c0_23], %31 {strides = array<i32>} : memref<8x128xf32, #tpu.memory_space<vmem>>, vector<8x128xf32>,
    return
  }
  func.func @transform_0(%arg0: i32) -> (i32, i32) {
    %c0_i32 = arith.constant 0 : i32
    %c0_i32_0 = arith.constant 0 : i32
    return %arg0, %c0_i32 : i32, i32
  }
  func.func @transform_1(%arg0: i32) -> (i32, i32) {
    %c0_i32 = arith.constant 0 : i32
    %c0_i32_0 = arith.constant 0 : i32
    %c0_i32_1 = arith.constant 0 : i32
    return %c0_i32, %c0_i32_0 : i32, i32
  }
  func.func @transform_2(%arg0: i32) -> (i32, i32, i32) {
    %c0_i32 = arith.constant 0 : i32
    %c0_i32_0 = arith.constant 0 : i32
    %c0_i32_1 = arith.constant 0 : i32
    %c0_i32_2 = arith.constant 0 : i32
    return %c0_i32, %c0_i32_0, %c0_i32_1 : i32, i32, i32
  }
  func.func @transform_3(%arg0: i32) -> (i32, i32) {
    %c0_i32 = arith.constant 0 : i32
    %c0_i32_0 = arith.constant 0 : i32
    %c0_i32_1 = arith.constant 0 : i32
    return %c0_i32, %c0_i32_0 : i32, i32
  }
  func.func @transform_4(%arg0: i32) -> (i32, i32) {
    %c0_i32 = arith.constant 0 : i32
    %c0_i32_0 = arith.constant 0 : i32
    %c0_i32_1 = arith.constant 0 : i32
    return %c0_i32, %c0_i32_0 : i32, i32
  }
  func.func @transform_5(%arg0: i32) -> (i32, i32) {
    %c0_i32 = arith.constant 0 : i32
    %c0_i32_0 = arith.constant 0 : i32
    return %arg0, %c0_i32 : i32, i32
  }
}

</mosaic_0001>

<bundles_post_ra>
// kernel: critic_forward.1
= control target key start
LH: loop header
LB: loop body
LE: loop exit
PB: predicated region body
PF: predicated region fallthrough
CT: control target
= control target key end

     0   :  { %10 = vsyncpa [#allocation3], 0  ;;  %s571_s0 = inlined_call_operand.vmem [shape: bf16[8,8], index: 0, kind: input, shape index: {}]   ;;  %s572_s1 = inlined_call_operand.vmem [shape: bf16[8,128], index: 1, kind: input, shape index: {}]   ;;  %s573_s2 = inlined_call_operand.hbm [shape: bf16[2,128,128], index: 2, kind: input, shape index: {}]   ;;  %s574_s3 = inlined_call_operand.hbm [shape: bf16[128,128], index: 3, kind: input, shape index: {}]   ;;  %s575_s4 = inlined_call_operand.vmem [shape: f32[4,128], index: 4, kind: input, shape index: {}]   ;;  %s576_s5 = inlined_call_operand.vmem [shape: f32[8,128], index: 5, kind: output, shape index: {}]  }
   0x1   :  { %s20_s20 = sshll.u32 %s573_s2, 4  ;;  %s21_s20 = int_to_ptr.hbm [resolvable:$true] %s20_s20 }
   0x2   :  { %11 = vsyncpa [#allocation5], 0  ;;  %s510_s21 = smov [#allocation2]   ;;  %s33_s25 = sshll.u32 %s574_s3, 4  ;;  %s34_s25 = int_to_ptr.hbm [resolvable:$true] %s33_s25 }
   0x3   :  { %s22_s22 = sshll.u32 %s510_s21, 4  ;;  %s511_s26 = smov 64   ;;  %s23_s22 = int_to_ptr.vmem [resolvable:$true] %s22_s22 }
   0x4   :  { %s512_s27 = smov 4   ;;  %s513_s28 = smov [#allocation4]  }
   0x5   :  { %28 = dma.hbm_to_vmem [thread:$0]  %s21_s20, 2048, %s23_s22, [#allocation3], %s511_s26, %s511_s26, %s512_s27  }
   0x6   :  { %s35_s29 = sshll.u32 %s513_s28, 4  ;;  %s36_s29 = int_to_ptr.vmem [resolvable:$true] %s35_s29 }
   0x7   :  { %41 = dma.hbm_to_vmem [thread:$0]  %s34_s25, 1024, %s36_s29, [#allocation5], %s511_s26, %s511_s26, %s512_s27  }
   0x8   :  { %506 = dma.done.wait [#allocation3], 2048  }
   0x9   :  { %507 = vsyncadd [#allocation3], 4294965248 }
   0xa   :  { %508 = dma.done.wait [#allocation5], 1024  }
   0xb   :  { %509 = vsyncadd [#allocation5], 4294966272  ;;  %vm61_vm0 = vcmask 1043456   ;;  %v54_v0 = vld [vmem:[%s572_s1] sm:$0xf]  ;;  %v433_v1 = vld [vmem:[#allocation2 + $0x38] sm:$0xff] }
   0xc   :  { %v63_v2 = vsel %vm61_vm0, %v54_v0, 0  ;;  %v53_v3 = vld [vmem:[%s571_s0] sm:$0xf]  ;;  %vm57_vm1 = vcmask 64512   ;;  %146 = vmatpush.bf16.msra.mxu1 %v433_v1  ;;  %v432_v4 = vld [vmem:[#allocation2 + $0x30] sm:$0xff]  ;;  %v431_v5 = vld [vmem:[#allocation2 + $0x28] sm:$0xff] }
   0xd   :  { %72 = vmatpush.bf16.msra.mxu0 %v63_v2  ;;  %v430_v6 = vld [vmem:[#allocation2 + $0x20] sm:$0xff]  ;;  %v429_v7 = vld [vmem:[#allocation2 + $0x18] sm:$0xff]  ;;  %v428_v8 = vld [vmem:[#allocation2 + $0x10] sm:$0xff] }
   0xe   :  { %v427_v9 = vld [vmem:[#allocation2 + $0x8] sm:$0xff]  ;;  %v426_v10 = vld [vmem:[#allocation2] sm:$0xff]  ;;  %v441_v11 = vld [vmem:[#allocation2 + $0x78] sm:$0xff] }
   0xf   :  { %228 = vmatpush.bf16.msra.mxu2 %v441_v11  ;;  %v440_v12 = vld [vmem:[#allocation2 + $0x70] sm:$0xff]  ;;  %v439_v13 = vld [vmem:[#allocation2 + $0x68] sm:$0xff]  ;;  %v438_v14 = vld [vmem:[#allocation2 + $0x60] sm:$0xff] }
  0x10   :  { %329 = vmatmul.msk.bf16.vlgmr.msra.gmra.mxu0 %vm57_vm1, %v53_v3  ;;  %147 = vmatpush.bf16.msra.mxu1 %v432_v4  ;;  %v437_v15 = vld [vmem:[#allocation2 + $0x58] sm:$0xff]  ;;  %v436_v16 = vld [vmem:[#allocation2 + $0x50] sm:$0xff]  ;;  %v454_v17 = vld [vmem:[%s575_s4] ss:$0 sm:$0xff] }
  0x11   :  { %v435_v23 = vld [vmem:[#allocation2 + $0x48] sm:$0xff]  ;;  %v434_v24 = vld [vmem:[#allocation2 + $0x40] sm:$0xff]  ;;  %v449_v25 = vld [vmem:[#allocation4 + $0x38] sm:$0xff] }
  0x12   :  { %309 = vmatpush.bf16.msra.mxu3 %v449_v25  ;;  %v448_v26 = vld [vmem:[#allocation4 + $0x30] sm:$0xff]  ;;  %v447_v27 = vld [vmem:[#allocation4 + $0x28] sm:$0xff]  ;;  %v446_v28 = vld [vmem:[#allocation4 + $0x20] sm:$0xff] }
  0x13   :  { %229 = vmatpush.bf16.msra.mxu2 %v440_v12  ;;  %v445_v29 = vld [vmem:[#allocation4 + $0x18] sm:$0xff]  ;;  %v444_v30 = vld [vmem:[#allocation4 + $0x10] sm:$0xff]  ;;  %v455_v31 = vld [vmem:[%s575_s4 + $0x1] ss:$0 sm:$0xff] }
  0x14   :  { %148 = vmatpush.bf16.msra.mxu1 %v431_v5  ;;  %v443_v37 = vld [vmem:[#allocation4 + $0x8] sm:$0xff]  ;;  %v442_v38 = vld [vmem:[#allocation4] sm:$0xff] }
  0x15   :  { %v456_v39 = vld [vmem:[%s575_s4 + $0x2] ss:$0 sm:$0xff]  ;;  %v457_v45 = vld [vmem:[%s575_s4 + $0x3] ss:$0 sm:$0xff] }
  0x16   :  { %310 = vmatpush.bf16.msra.mxu3 %v448_v26 }
  0x17   :  { %230 = vmatpush.bf16.msra.mxu2 %v439_v13 }
  0x18   :  { %149 = vmatpush.bf16.msra.mxu1 %v430_v6 }
  0x1a   :  { %311 = vmatpush.bf16.msra.mxu3 %v447_v27 }
  0x1b   :  { %231 = vmatpush.bf16.msra.mxu2 %v438_v14 }
  0x1c   :  { %150 = vmatpush.bf16.msra.mxu1 %v429_v7 }
  0x1e   :  { %312 = vmatpush.bf16.msra.mxu3 %v446_v28 }
  0x1f   :  { %232 = vmatpush.bf16.msra.mxu2 %v437_v15 }
  0x20   :  { %151 = vmatpush.bf16.msra.mxu1 %v428_v8 }
  0x22   :  { %313 = vmatpush.bf16.msra.mxu3 %v445_v29 }
  0x23   :  { %233 = vmatpush.bf16.msra.mxu2 %v436_v16 }
  0x24   :  { %152 = vmatpush.bf16.msra.mxu1 %v427_v9 }
  0x26   :  { %314 = vmatpush.bf16.msra.mxu3 %v444_v30 }
  0x27   :  { %234 = vmatpush.bf16.msra.mxu2 %v435_v23 }
  0x28   :  { %153 = vmatpush.bf16.msra.mxu1 %v426_v10 }
  0x2a   :  { %315 = vmatpush.bf16.msra.mxu3 %v443_v37 }
  0x2b   :  { %235 = vmatpush.bf16.msra.mxu2 %v434_v24 }
  0x2e   :  { %316 = vmatpush.bf16.msra.mxu3 %v442_v38 }
  0x8d   :  { %v74_v18 = vpop.f32.mrf.mxu0 }
  0x8e   :  { %v75_v19 = vadd.f32 %v454_v17, %v74_v18 }
  0x90   :  { %v78_v20 = vmax.f32 %v75_v19, 0.0 }
  0x92   :  { %v79_v21 = vpack.c.bf16 %v78_v20, %v78_v20 }
  0x94   :  { %154 = vmatmul.bf16.vlgmr.msra.gmra.mxu1 %v79_v21 }
  0x95   :  { %v76_v22 = vpop.f32.mrf.mxu0 }
 0x111   :  { %v155_v32 = vpop.f32.mrf.mxu1 }
 0x112   :  { %v156_v33 = vadd.f32 %v455_v31, %v155_v32 }
 0x114   :  { %v159_v34 = vmax.f32 %v156_v33, 0.0 }
 0x116   :  { %v160_v35 = vpack.c.bf16 %v159_v34, %v159_v34 }
 0x118   :  { %236 = vmatmul.bf16.vlgmr.msra.gmra.mxu2 %v160_v35 }
 0x119   :  { %v157_v36 = vpop.f32.mrf.mxu1 }
 0x19b   :  { %v237_v40 = vpop.f32.mrf.mxu2 }
 0x19c   :  { %v238_v41 = vadd.f32 %v456_v39, %v237_v40 }
 0x19e   :  { %v241_v42 = vmax.f32 %v238_v41, 0.0 }
 0x1a0   :  { %v242_v43 = vpack.c.bf16 %v241_v42, %v241_v42 }
 0x1a2   :  { %317 = vmatmul.bf16.vlgmr.msra.gmra.mxu3 %v242_v43 }
 0x1a3   :  { %v239_v44 = vpop.f32.mrf.mxu2 }
 0x225   :  { %v318_v46 = vpop.f32.mrf.mxu3 }
 0x226   :  { %v319_v47 = vadd.f32 %v457_v45, %v318_v46 }
 0x228   :  { %322 = vst [vmem:[%s576_s5] sm:$0xff] %v319_v47 }
 0x22d   :  { %v320_v48 = vpop.f32.mrf.mxu3 }
 0x22e   :  { %327 = vsyncpa [#allocation3], 1 }
 0x22f   :  { %328 = vsyncpa [#allocation5], 1 }

</bundles_post_ra>
